<compile_context>
chip_gen: v5e
topology: v5e:2x2
jax: 0.10.0
libtpu: 0.0.40
codegen_flags: <defaults>
</compile_context>

<pallas_src>
import jax
import jax.numpy as jnp
from jax.experimental import pallas as pl
from jax.experimental.pallas import tpu as pltpu

DIM = 8            # hidden width of each coupling MLP (module default)
SLOPE = 0.01       # torch.nn.LeakyReLU default negative_slope


def _lrelu(v):
    return jnp.where(v >= 0, v, SLOPE * v)


def coupling_kernel(x_ref, wh_ref, vec_ref, out_ref):
    """One (2, TB) batch tile: row 0 = zl, row 1 = zr (batch on lanes).

    wh_ref : (4, 2D, 2D) fused block-diagonal weights, already transposed so
             that h_new = W @ h.  Slot 3 is the (zero-padded) output layer.
    vec_ref: (2D, 8) column slab: col 0 = input-layer weights, col 1 = input
             bias, cols 2..4 = hidden biases, col 5 = output bias (rows 0,1),
             cols 6,7 = zero padding.
    """
    x = x_ref[...]                       # (2, TB)
    zl = x[0:1, :]                       # (1, TB)
    zr = x[1:2, :]                       # (1, TB)

    # Layer 1: Linear(1, D) for both nets == broadcasted scale+shift on the VPU.
    h = _lrelu(vec_ref[:, 0:1] * zl + vec_ref[:, 1:2])           # (2D, TB)

    # Layers 2..4: fused block-diagonal (2D, 2D) matmuls on the MXU (N = TB).
    for k in range(3):                                           # static unroll
        w = wh_ref[k]                                            # (2D, 2D)
        b = vec_ref[:, 2 + k:3 + k]                              # (2D, 1)
        h = _lrelu(jnp.dot(w, h, preferred_element_type=jnp.float32) + b)

    # Output layer folded into the same matmul shape; row 0 = log_s, row 1 = b.
    f = jnp.dot(wh_ref[3], h, preferred_element_type=jnp.float32) + vec_ref[:, 5:6]
    log_s = f[0:1, :]
    b = f[1:2, :]

    yr = zr * jnp.exp(log_s) + b

    # Direct row stores -- no lane concat, no extra VMEM materialization.
    out_ref[0:1, :] = zl.astype(out_ref.dtype)
    out_ref[1:2, :] = yr.astype(out_ref.dtype)


def _block_diag(a, b):
    z = jnp.zeros_like(a)
    return jnp.concatenate(
        [jnp.concatenate([a, z], axis=1),
         jnp.concatenate([z, b], axis=1)], axis=0)


def pack_params(params_s, params_b):
    """Pack the 20 (in,out)-layout parameters into two kernel slabs."""
    (w1s, b1s, w2s, b2s, w3s, b3s, w4s, b4s, w5s, b5s) = params_s
    (w1b, b1b, w2b, b2b, w3b, b3b, w4b, b4b, w5b, b5b) = params_b
    d = w2s.shape[0]
    d2 = 2 * d

    # Hidden layers: transpose (in,out) -> (out,in) and make block-diagonal.
    wh2 = _block_diag(w2s.T, w2b.T)
    wh3 = _block_diag(w3s.T, w3b.T)
    wh4 = _block_diag(w4s.T, w4b.T)
    # Output layer padded to (2D, 2D): row 0 -> log_s head, row 1 -> b head.
    wout = jnp.zeros((d2, d2), jnp.float32)
    wout = wout.at[0, :d].set(w5s[0]).at[1, d:].set(w5b[0])
    wh = jnp.stack([wh2, wh3, wh4, wout], axis=0)                # (4, 2D, 2D)

    def col(a_s, a_b):
        return jnp.concatenate([a_s[0], a_b[0]])                 # (2D,)

    bout = jnp.zeros((d2,), jnp.float32).at[0].set(b5s[0, 0]).at[1].set(b5b[0, 0])
    zcol = jnp.zeros((d2,), jnp.float32)
    vec = jnp.stack(
        [col(w1s, w1b), col(b1s, b1b), col(b2s, b2b), col(b3s, b3b),
         col(b4s, b4b), bout, zcol, zcol], axis=1)               # (2D, 8)
    return wh.astype(jnp.float32), vec.astype(jnp.float32)


def coupling_forward(x, params_s, params_b, *, tb=1024):
    """CouplingLayer.forward.  x: (B, 2) float32 -> (B, 2) float32."""
    assert tb % 128 == 0, "tile must be a multiple of the 128-lane width"
    B = x.shape[0]
    wh, vec = pack_params(params_s, params_b)
    d2 = wh.shape[1]

    # Batch-on-lanes layout; pad the lane (batch) axis to a tile multiple.
    nb = -(-B // tb)                     # cdiv
    bp = nb * tb
    xt = jnp.zeros((2, bp), x.dtype).at[:, :B].set(x.T)

    cost = pl.CostEstimate(
        flops=int(bp) * (4 * 2 * d2 * d2 + 6 * d2 + 8),
        transcendentals=int(bp),
        bytes_accessed=int(4 * (2 * 2 * bp) + 4 * wh.size + 4 * vec.size),
    )

    out_t = pl.pallas_call(
        coupling_kernel,
        out_shape=jax.ShapeDtypeStruct((2, bp), x.dtype),
        grid_spec=pltpu.PrefetchScalarGridSpec(
            num_scalar_prefetch=0,
            grid=(nb,),
            in_specs=[
                pl.BlockSpec((2, tb), lambda i: (0, i)),          # x tile (pipelined)
                pl.BlockSpec((4, d2, d2), lambda i: (0, 0, 0)),   # weights (resident)
                pl.BlockSpec((d2, 8), lambda i: (0, 0)),          # bias/vec slab (resident)
            ],
            out_specs=pl.BlockSpec((2, tb), lambda i: (0, i)),
        ),
        compiler_params=pltpu.CompilerParams(
            dimension_semantics=("parallel",),   # v7x: shard batch tiles over both TCs
        ),
        cost_estimate=cost,
    )(xt, wh, vec)

    return out_t[:, :B].T


def init_mlp_params(key, dim):
    """Deterministic init for Sequential(Linear(1,d), LReLU, 3x[Linear(d,d), LReLU], Linear(d,1)).

    Weights stored as (in_features, out_features); the final layer's weight is
    a (1, dim) row (== torch Linear(dim, 1).weight).
    """
    ks = jax.random.split(key, 10)
    s1 = 1.0                      # 1/sqrt(fan_in=1)
    sd = 1.0 / jnp.sqrt(dim)      # 1/sqrt(fan_in=dim)
    w1 = jax.random.uniform(ks[0], (1, dim), jnp.float32, -s1, s1)
    b1 = jax.random.uniform(ks[1], (1, dim), jnp.float32, -s1, s1)
    w2 = jax.random.uniform(ks[2], (dim, dim), jnp.float32, -sd, sd)
    b2 = jax.random.uniform(ks[3], (1, dim), jnp.float32, -sd, sd)
    w3 = jax.random.uniform(ks[4], (dim, dim), jnp.float32, -sd, sd)
    b3 = jax.random.uniform(ks[5], (1, dim), jnp.float32, -sd, sd)
    w4 = jax.random.uniform(ks[6], (dim, dim), jnp.float32, -sd, sd)
    b4 = jax.random.uniform(ks[7], (1, dim), jnp.float32, -sd, sd)
    w5 = jax.random.uniform(ks[8], (1, dim), jnp.float32, -sd, sd)   # Linear(dim,1).weight
    b5 = jax.random.uniform(ks[9], (1, 1), jnp.float32, -sd, sd)
    return (w1, b1, w2, b2, w3, b3, w4, b4, w5, b5)


def reference_forward(x, params_s, params_b):
    """Pure-JAX reference matching the PyTorch module semantics."""
    zl, zr = x[:, 0:1], x[:, 1:2]

    def mlp(z, p):
        w1, b1, w2, b2, w3, b3, w4, b4, w5, b5 = p
        h = _lrelu(z * w1 + b1)
        h = _lrelu(h @ w2 + b2)
        h = _lrelu(h @ w3 + b3)
        h = _lrelu(h @ w4 + b4)
        return jnp.sum(h * w5, axis=-1, keepdims=True) + b5

    log_s = mlp(zl, params_s)
    b = mlp(zl, params_b)
    yr = zr * jnp.exp(log_s) + b
    return jnp.concatenate([zl, yr], axis=1)


if __name__ == "__main__":
    key = jax.random.PRNGKey(0)
    k_x, k_s, k_b = jax.random.split(key, 3)

    batch = 300                      # deliberately not a multiple of the tile
    x = jax.random.normal(k_x, (batch, 2), jnp.float32)

    params_s = init_mlp_params(k_s, DIM)   # "nns" -> log_s
    params_b = init_mlp_params(k_b, DIM)   # "nnb" -> b

    # tb=128 exercises padding + a 3-step pipelined grid at this small batch;
    # production batch sizes should use the larger default tile (1024).
    out = coupling_forward(x, params_s, params_b, tb=128)
    out = jax.block_until_ready(out)

    ref = reference_forward(x, params_s, params_b)
    assert out.shape == (batch, 2) and out.dtype == jnp.float32
    assert jnp.allclose(out, ref, atol=1e-4, rtol=1e-4), "mismatch vs reference"

    print("KERNEL_OK")
</pallas_src>

<mosaic_0001>
module attributes {stable_mosaic.version = 11 : i64} {
  func.func @coupling_kernel(%arg0: i32, %arg1: memref<2x128xf32, #tpu.memory_space<vmem>>, %arg2: memref<4x16x16xf32, #tpu.memory_space<vmem>>, %arg3: memref<16x8xf32, #tpu.memory_space<vmem>>, %arg4: memref<2x128xf32, #tpu.memory_space<vmem>>) attributes {dimension_semantics = [#tpu.dimension_semantics<parallel>], iteration_bounds = array<i64: 3>, scalar_prefetch = 0 : i64, scratch_operands = 0 : i64, tpu.core_type = #tpu.core_type<tc>, window_params = [{transform_indices = @transform_0, window_bounds = array<i64: 2, 128>}, {pipeline_mode = #tpu.pipeline_mode<synchronous>, transform_indices = @transform_1, window_bounds = array<i64: 4, 16, 16>}, {pipeline_mode = #tpu.pipeline_mode<synchronous>, transform_indices = @transform_2, window_bounds = array<i64: 16, 8>}, {transform_indices = @transform_3, window_bounds = array<i64: 2, 128>}]} {
    %c0 = arith.constant 0 : index
    %c0_0 = arith.constant 0 : index
    %0 = vector.load %arg1[%c0, %c0_0] : memref<2x128xf32, #tpu.memory_space<vmem>>, vector<2x128xf32>
    %1 = vector.extract_strided_slice %0 {offsets = [0, 0], sizes = [1, 128], strides = [1, 1]} : vector<2x128xf32> to vector<1x128xf32>
    %2 = vector.extract_strided_slice %0 {offsets = [1, 0], sizes = [1, 128], strides = [1, 1]} : vector<2x128xf32> to vector<1x128xf32>
    %c0_1 = arith.constant 0 : index
    %c0_2 = arith.constant 0 : index
    %3 = vector.load %arg3[%c0_1, %c0_2] : memref<16x8xf32, #tpu.memory_space<vmem>>, vector<16x1xf32>
    %4 = vector.broadcast %3 : vector<16x1xf32> to vector<16x128xf32>
    %5 = vector.broadcast %1 : vector<1x128xf32> to vector<16x128xf32>
    %6 = arith.mulf %4, %5 : vector<16x128xf32>
    %c0_3 = arith.constant 0 : index
    %c1 = arith.constant 1 : index
    %7 = vector.load %arg3[%c0_3, %c1] : memref<16x8xf32, #tpu.memory_space<vmem>>, vector<16x1xf32>
    %8 = vector.broadcast %7 : vector<16x1xf32> to vector<16x128xf32>
    %9 = arith.addf %6, %8 : vector<16x128xf32>
    %cst = arith.constant 0.000000e+00 : f32
    %10 = vector.broadcast %cst : f32 to vector<16x128xf32>
    %11 = arith.cmpf oge, %9, %10 : vector<16x128xf32>
    %cst_4 = arith.constant 0.00999999977 : f32
    %12 = vector.broadcast %cst_4 : f32 to vector<16x128xf32>
    %13 = arith.mulf %12, %9 : vector<16x128xf32>
    %14 = arith.select %11, %9, %13 : vector<16x128xi1>, vector<16x128xf32>
    %c0_5 = arith.constant 0 : index
    %c0_6 = arith.constant 0 : index
    %c0_7 = arith.constant 0 : index
    %15 = vector.load %arg2[%c0_5, %c0_6, %c0_7] : memref<4x16x16xf32, #tpu.memory_space<vmem>>, vector<1x16x16xf32>
    %16 = vector.shape_cast %15 : vector<1x16x16xf32> to vector<16x16xf32>
    %c0_8 = arith.constant 0 : index
    %c2 = arith.constant 2 : index
    %17 = vector.load %arg3[%c0_8, %c2] : memref<16x8xf32, #tpu.memory_space<vmem>>, vector<16x1xf32>
    %cst_9 = arith.constant dense<0.000000e+00> : vector<16x128xf32>
    %18 = tpu.matmul %16, %14, %cst_9 {dimension_numbers = #tpu.dot_dimension_numbers<[1], [0], [0], [1], [0, 0, 1, 1], [], []>} : vector<16x16xf32>, vector<16x128xf32>, vector<16x128xf32> -> vector<16x128xf32>
    %19 = vector.broadcast %17 : vector<16x1xf32> to vector<16x128xf32>
    %20 = arith.addf %18, %19 : vector<16x128xf32>
    %cst_10 = arith.constant 0.000000e+00 : f32
    %21 = vector.broadcast %cst_10 : f32 to vector<16x128xf32>
    %22 = arith.cmpf oge, %20, %21 : vector<16x128xf32>
    %cst_11 = arith.constant 0.00999999977 : f32
    %23 = vector.broadcast %cst_11 : f32 to vector<16x128xf32>
    %24 = arith.mulf %23, %20 : vector<16x128xf32>
    %25 = arith.select %22, %20, %24 : vector<16x128xi1>, vector<16x128xf32>
    %c1_12 = arith.constant 1 : index
    %c0_13 = arith.constant 0 : index
    %c0_14 = arith.constant 0 : index
    %26 = vector.load %arg2[%c1_12, %c0_13, %c0_14] : memref<4x16x16xf32, #tpu.memory_space<vmem>>, vector<1x16x16xf32>
    %27 = vector.shape_cast %26 : vector<1x16x16xf32> to vector<16x16xf32>
    %c0_15 = arith.constant 0 : index
    %c3 = arith.constant 3 : index
    %28 = vector.load %arg3[%c0_15, %c3] : memref<16x8xf32, #tpu.memory_space<vmem>>, vector<16x1xf32>
    %cst_16 = arith.constant dense<0.000000e+00> : vector<16x128xf32>
    %29 = tpu.matmul %27, %25, %cst_16 {dimension_numbers = #tpu.dot_dimension_numbers<[1], [0], [0], [1], [0, 0, 1, 1], [], []>} : vector<16x16xf32>, vector<16x128xf32>, vector<16x128xf32> -> vector<16x128xf32>
    %30 = vector.broadcast %28 : vector<16x1xf32> to vector<16x128xf32>
    %31 = arith.addf %29, %30 : vector<16x128xf32>
    %cst_17 = arith.constant 0.000000e+00 : f32
    %32 = vector.broadcast %cst_17 : f32 to vector<16x128xf32>
    %33 = arith.cmpf oge, %31, %32 : vector<16x128xf32>
    %cst_18 = arith.constant 0.00999999977 : f32
    %34 = vector.broadcast %cst_18 : f32 to vector<16x128xf32>
    %35 = arith.mulf %34, %31 : vector<16x128xf32>
    %36 = arith.select %33, %31, %35 : vector<16x128xi1>, vector<16x128xf32>
    %c2_19 = arith.constant 2 : index
    %c0_20 = arith.constant 0 : index
    %c0_21 = arith.constant 0 : index
    %37 = vector.load %arg2[%c2_19, %c0_20, %c0_21] : memref<4x16x16xf32, #tpu.memory_space<vmem>>, vector<1x16x16xf32>
    %38 = vector.shape_cast %37 : vector<1x16x16xf32> to vector<16x16xf32>
    %c0_22 = arith.constant 0 : index
    %c4 = arith.constant 4 : index
    %39 = vector.load %arg3[%c0_22, %c4] : memref<16x8xf32, #tpu.memory_space<vmem>>, vector<16x1xf32>
    %cst_23 = arith.constant dense<0.000000e+00> : vector<16x128xf32>
    %40 = tpu.matmul %38, %36, %cst_23 {dimension_numbers = #tpu.dot_dimension_numbers<[1], [0], [0], [1], [0, 0, 1, 1], [], []>} : vector<16x16xf32>, vector<16x128xf32>, vector<16x128xf32> -> vector<16x128xf32>
    %41 = vector.broadcast %39 : vector<16x1xf32> to vector<16x128xf32>
    %42 = arith.addf %40, %41 : vector<16x128xf32>
    %cst_24 = arith.constant 0.000000e+00 : f32
    %43 = vector.broadcast %cst_24 : f32 to vector<16x128xf32>
    %44 = arith.cmpf oge, %42, %43 : vector<16x128xf32>
    %cst_25 = arith.constant 0.00999999977 : f32
    %45 = vector.broadcast %cst_25 : f32 to vector<16x128xf32>
    %46 = arith.mulf %45, %42 : vector<16x128xf32>
    %47 = arith.select %44, %42, %46 : vector<16x128xi1>, vector<16x128xf32>
    %c3_26 = arith.constant 3 : index
    %c0_27 = arith.constant 0 : index
    %c0_28 = arith.constant 0 : index
    %48 = vector.load %arg2[%c3_26, %c0_27, %c0_28] : memref<4x16x16xf32, #tpu.memory_space<vmem>>, vector<1x16x16xf32>
    %49 = vector.shape_cast %48 : vector<1x16x16xf32> to vector<16x16xf32>
    %cst_29 = arith.constant dense<0.000000e+00> : vector<16x128xf32>
    %50 = tpu.matmul %49, %47, %cst_29 {dimension_numbers = #tpu.dot_dimension_numbers<[1], [0], [0], [1], [0, 0, 1, 1], [], []>} : vector<16x16xf32>, vector<16x128xf32>, vector<16x128xf32> -> vector<16x128xf32>
    %c0_30 = arith.constant 0 : index
    %c5 = arith.constant 5 : index
    %51 = vector.load %arg3[%c0_30, %c5] : memref<16x8xf32, #tpu.memory_space<vmem>>, vector<16x1xf32>
    %52 = vector.broadcast %51 : vector<16x1xf32> to vector<16x128xf32>
    %53 = arith.addf %50, %52 : vector<16x128xf32>
    %54 = vector.extract_strided_slice %53 {offsets = [0, 0], sizes = [1, 128], strides = [1, 1]} : vector<16x128xf32> to vector<1x128xf32>
    %55 = vector.extract_strided_slice %53 {offsets = [1, 0], sizes = [1, 128], strides = [1, 1]} : vector<16x128xf32> to vector<1x128xf32>
    %56 = math.exp %54 : vector<1x128xf32>
    %57 = arith.mulf %2, %56 : vector<1x128xf32>
    %58 = arith.addf %57, %55 : vector<1x128xf32>
    %c0_31 = arith.constant 0 : index
    %c0_32 = arith.constant 0 : index
    %59 = vector.load %arg4[%c0_31, %c0_32] : memref<2x128xf32, #tpu.memory_space<vmem>>, vector<1x128xf32>
    tpu.vector_store %arg4[%c0_31, %c0_32], %1 {strides = array<i32>} : memref<2x128xf32, #tpu.memory_space<vmem>>, vector<1x128xf32>,
    %c1_33 = arith.constant 1 : index
    %c0_34 = arith.constant 0 : index
    %60 = vector.load %arg4[%c1_33, %c0_34] : memref<2x128xf32, #tpu.memory_space<vmem>>, vector<1x128xf32>
    tpu.vector_store %arg4[%c1_33, %c0_34], %58 {strides = array<i32>} : memref<2x128xf32, #tpu.memory_space<vmem>>, vector<1x128xf32>,
    return
  }
  func.func @transform_0(%arg0: i32) -> (i32, i32) {
    %c0_i32 = arith.constant 0 : i32
    %c0_i32_0 = arith.constant 0 : i32
    return %c0_i32, %arg0 : i32, i32
  }
  func.func @transform_1(%arg0: i32) -> (i32, i32, i32) {
    %c0_i32 = arith.constant 0 : i32
    %c0_i32_0 = arith.constant 0 : i32
    %c0_i32_1 = arith.constant 0 : i32
    %c0_i32_2 = arith.constant 0 : i32
    return %c0_i32, %c0_i32_0, %c0_i32_1 : i32, i32, i32
  }
  func.func @transform_2(%arg0: i32) -> (i32, i32) {
    %c0_i32 = arith.constant 0 : i32
    %c0_i32_0 = arith.constant 0 : i32
    %c0_i32_1 = arith.constant 0 : i32
    return %c0_i32, %c0_i32_0 : i32, i32
  }
  func.func @transform_3(%arg0: i32) -> (i32, i32) {
    %c0_i32 = arith.constant 0 : i32
    %c0_i32_0 = arith.constant 0 : i32
    return %c0_i32, %arg0 : i32, i32
  }
}

</mosaic_0001>

<bundles_post_ra>
// kernel: tpu_custom_call.1
= control target key start
LH: loop header
LB: loop body
LE: loop exit
PB: predicated region body
PF: predicated region fallthrough
CT: control target
= control target key end

     0   :  { %8 = vsyncpa [#allocation3], 0  ;;  %s841_s0 = inlined_call_operand.vmem [shape: f32[2,384], index: 0, kind: input, shape index: {}]   ;;  %s842_s1 = inlined_call_operand.hbm [shape: f32[4,16,16], index: 1, kind: input, shape index: {}]   ;;  %s843_s2 = inlined_call_operand.vmem [shape: f32[16,8], index: 2, kind: input, shape index: {}]   ;;  %s844_s3 = inlined_call_operand.hbm [shape: f32[2,384], index: 3, kind: output, shape index: {}]  }
   0x1   :  { %9 = vsyncpa [#allocation4], 0 }
   0x2   :  { %11 = vsyncpa [#allocation4 + $0x1], 0  ;;  %s703_s12 = smov 0   ;;  %s705_s13 = smov 0  }
   0x3   :  { %s707_s14 = smov 0   ;;  %s709_s15 = smov 0  }
   0x4 LB: > { %s724_s16 = sadd.s32 4294967295, %s672_s15   ;;  %s487_s17 = sadd.s32 4294967294, %s672_s15   ;;  %s672_s15 = sphi %s709_s15, %s850_s15   ;;  %s668_s14 = sphi %s707_s14, %s849_s14   ;;  %s664_s13 = sphi %s705_s13, %s848_s13   ;;  %s660_s12 = sphi %s703_s12, %s847_s12  }
   0x5   : > { %s728_s18 = sadd.s32 1, %s672_s15   ;;  %s92_s19 = sadd.s32 1, %s668_s14 }
   0x6   : > { %s89_s20 = ssub.s32 %s672_s15, %s728_s18  ;;  %p102_p0 = scmp.ne.s32.totalorder %s668_s14, %s664_s13 }
   0x7   : > { %p90_p1 = scmp.eq.s32.totalorder %s89_s20, 0  ;;  %p103_p2 = scmp.eq.s32.totalorder %s724_s16, 2 }
   0x8   : > { %p108_p3 = scmp.ne.s32.totalorder %s664_s13, %s660_s12  ;;  %p109_p4 = scmp.eq.s32.totalorder %s487_s17, 2 }
   0x9   : > { %s739_s21 = scalar_select %p90_p1, %s668_s14, %s92_s19  }
   0xa   : > { %p741_p5 = por %p103_p2, %p102_p0  ;;  %p745_p6 = por %p109_p4, %p108_p3 }
   0xb   : > { %p488_p7 = scmp.ge.s32.totalorder %s672_s15, 1  ;;  %p116_p8 = scmp.lt.s32.totalorder %s672_s15, 4 }
   0xc   : > { %p521_p9 = scmp.eq.s32.totalorder %s724_s16, 0  ;;  %s127_s26 = sshll.u32 %s842_s1, 4  ;;  %s128_s26 = int_to_ptr.hbm [resolvable:$true] %s127_s26 }
   0xd   : > { %p117_p10 = pnand %p488_p7, %p116_p8  ;;  %s674_s27 = smov [#allocation2]  }
   0xe   : > { %s129_s28 = sshll.u32 %s674_s27, 4  ;;  %s675_s29 = smov 128   ;;  %s130_s28 = int_to_ptr.vmem [resolvable:$true] %s129_s28 }
   0xf   : > { %p513_p11 = pneg %p117_p10  ;;  %s676_s30 = smov 8  }
  0x10   : > { %155 = sbr.rel (%p117_p10) target bundleno = 739 (0x2e3), region = 32 }
  0x11   : > { %p514_p12 = pnand %p521_p9, %p513_p11 }
  0x13   : > { %516 = dma.hbm_to_vmem [thread:$0]  (!%p514_p12), %s128_s26, 1024, %s130_s28, [#allocation3], %s675_s29, %s675_s29, %s676_s30  }
  0x15   : > { %651 = dma.done.wait (%p521_p9), [#allocation3], 1024  }
  0x16   : > { %653 = vsyncadd (%p521_p9), [#allocation3], 4294966272  ;;  %v677_v0 = vmov 1   ;;  %v678_v1 = vmov 0   ;;  %v764_v2 = vld [vmem:[%s843_s2 + $0x8] sm:$0xff]  ;;  %v771_v3 = vld [vmem:[%s843_s2] sm:$0xff] }
  0x17   : > { %566 = vset.pattern.permute.xlu1 %v677_v0  ;;  %565 = vset.pattern.permute.xlu0 %v678_v1  ;;  %p179_p13 = scmp.lt.s32.totalorder %s724_s16, 2  ;;  %s176_s9 = sand.u32 1, %s664_s13   ;;  %v679_v5 = vmov 2   ;;  %v215_v18 = vld [vmem:[#allocation2] sm:$0xff]  ;;  %vm225_vm2 = vcmask 130048   ;;  %v216_v20 = vld [vmem:[#allocation2 + $0x8] sm:$0xff] }
  0x18   : > { %204 = vperm.xlu1 %566, %v764_v2   ;;  %193 = vperm.xlu0 %565, %v764_v2   ;;  %s493_s11 = sshll.u32 %s176_s9, 1  ;;  %v680_v22 = vmov 3   ;;  %v262_v31 = vld [vmem:[#allocation2 + $0x10] sm:$0xff]  ;;  %v263_v33 = vld [vmem:[#allocation2 + $0x18] sm:$0xff]  ;;  %v681_v34 = vmov 4   ;;  %v308_v44 = vld [vmem:[#allocation2 + $0x20] sm:$0xff] }
  0x19   : > { %s180_s8 = scalar_select %p179_p13, %s724_s16, 2  ;;  %567 = vset.pattern.permute.xlu2 %v679_v5  ;;  %v309_v46 = vld [vmem:[#allocation2 + $0x28] sm:$0xff]  ;;  %v682_v47 = vmov 5   ;;  %v354_v57 = vld [vmem:[#allocation2 + $0x30] sm:$0xff]  ;;  %v355_v59 = vld [vmem:[#allocation2 + $0x38] sm:$0xff] }
  0x1a   : > { %s785_s24 = scalar_lea.vmem [#allocation5], %s493_s11  ;;  %222 = vperm.xlu2 %567, %v764_v2   ;;  %s504_s25 = sshll.u32 %s724_s16, 1 }
  0x1b   : > { %s494_s10 = sshll.u32 %s180_s8, 1  ;;  %s411_s28 = scalar_lea.hbm %s844_s3, %s504_s25 }
  0x1c   : > { %s182_s20 = scalar_lea.vmem %s841_s0, %s494_s10  ;;  %s413_s29 = sshll.u32 %s785_s24, 4  ;;  %s414_s29 = int_to_ptr.vmem [resolvable:$true] %s413_s29 }
  0x1d   : > { %v783_v4 = vld [vmem:[%s182_s20] sm:$0x3]  ;;  %s415_s30 = sshll.u32 %s411_s28, 4  ;;  %s401_s4 = scalar_lea.sflag [#allocation4], %s176_s9  ;;  %s416_s30 = int_to_ptr.hbm [resolvable:$true] %s415_s30 }
  0x1e   : > { %398 = vst [vmem:[%s785_s24] sm:$0x1] %v783_v4  ;;  %v196_v6 = vperm.slane %v783_v4, 0  ;;  %s620_s5 = sshra.s32 %s416_s30, 4  ;;  %s626_s8 = scalar_lea.hbm %s844_s3, 6  ;;  %s621_s5 = int_to_ptr.hbm [resolvable:$true] %s620_s5 }
  0x1f   : > { %s622_s16 = scalar_lea.hbm %s621_s5, 2  ;;  %p627_p3 = scmp.lt.s32.totalorder %s621_s5, %s844_s3 }
  0x20   : > { %200 = vperm.xlu1 %566, %v771_v3   ;;  %188 = vperm.xlu0 %565, %v771_v3   ;;  %p623_p0 = scmp.ne.s32.totalorder %s621_s5, %s622_s16  ;;  %p628_p4 = scmp.lt.s32.totalorder %s626_s8, %s622_s16 }
  0x22   : > { %218 = vperm.xlu2 %567, %v771_v3   ;;  %p624_p1 = pnand %p623_p0, %p741_p5  ;;  %p629_p7 = por %p628_p4, %p627_p3 }
  0x24   : > { %p625_p2 = pneg %p624_p1 }
  0x26   : > { %p630_p8 = pnand %p629_p7, %p625_p2 }
  0x28   : > { %569 = vset.pattern.permute.xlu1 %v680_v22  ;;  %568 = vset.pattern.permute.xlu0 %v680_v22 }
  0x29   : > { %265 = vperm.xlu1 %569, %v771_v3   ;;  %269 = vperm.xlu0 %568, %v764_v2  }
  0x2a   : > { %570 = vset.pattern.permute.xlu2 %v681_v34 }
  0x2b   : > { %315 = vperm.xlu2 %570, %v764_v2  }
  0x31   : > { %571 = vset.pattern.permute.xlu1 %v681_v34  ;;  %573 = vset.pattern.permute.xlu0 %v682_v47 }
  0x32   : > { %311 = vperm.xlu1 %571, %v771_v3  }
  0x33   : > { %572 = vset.pattern.permute.xlu2 %v682_v47 }
  0x34   : > { %357 = vperm.xlu2 %572, %v771_v3  }
  0x74   : > { %v223_v21 = vpop.permute.xlu2 %222 }
  0x7c   : > { %v219_v24 = vpop.permute.xlu2 %218 }
  0x85   : > { %v316_v50 = vpop.permute.xlu2 %315 }
  0x8a   : > { %v205_v7 = vpop.permute.xlu1 %204  ;;  %v194_v8 = vpop.permute.xlu0 %193 }
  0x8b   : > { %v198_v9 = vmul.f32 %v196_v6, %v194_v8 }
  0x8d   : > { %v208_v10 = vadd.f32 %v205_v7, %v198_v9 }
  0x8e   : > { %v358_v60 = vpop.permute.xlu2 %357 }
  0x8f   : > { %vm210_vm0 = vcmp.ge.f32.partialorder %v208_v10, 0.0  ;;  %v212_v11 = vmul.f32 0.01, %v208_v10 }
  0x91   : > { %v214_v12 = vsel %vm210_vm0, %v208_v10, %v212_v11 }
  0x92   : > { %v189_v13 = vpop.permute.xlu0 %188  ;;  %246 = vmatpush.msra.mxu0 %v214_v12  ;;  %v201_v15 = vpop.permute.xlu1 %200 }
  0x93   : > { %v197_v14 = vmul.f32 %v196_v6, %v189_v13 }
  0x95   : > { %v207_v16 = vadd.f32 %v201_v15, %v197_v14 }
  0x97   : > { %vm209_vm1 = vcmp.ge.f32.partialorder %v207_v16, 0.0  ;;  %v211_v17 = vmul.f32 0.01, %v207_v16 }
  0x99   : > { %v213_v19 = vsel %vm209_vm1, %v207_v16, %v211_v17 }
  0x9a   : > { %247 = vmatpush.msra.mxu0 %v213_v19 }
  0x9b   : > { %495 = vmatmul.msk.f32.vlgmr.msra.gmra.mxu0 %vm225_vm2, %v215_v18  ;;  %v266_v36 = vpop.permute.xlu1 %265  ;;  %v270_v37 = vpop.permute.xlu0 %269 }
  0xa3   : > { %496 = vmatmul.msk.f32.gmra.mxu0 %vm225_vm2, %v216_v20 }
  0xa4   : > { %v312_v49 = vpop.permute.xlu1 %311 }
 0x118   : > { %v249_v23 = vpop.f32.mrf.mxu0 }
 0x119   : > { %v250_v25 = vadd.f32 %v249_v23, %v219_v24 }
 0x11b   : > { %v257_v29 = vmul.f32 0.01, %v250_v25  ;;  %vm255_vm4 = vcmp.ge.f32.partialorder %v250_v25, 0.0 }
 0x11d   : > { %v259_v32 = vsel %vm255_vm4, %v250_v25, %v257_v29 }
 0x120   : > { %v252_v26 = vpop.f32.mrf.mxu0 }
 0x121   : > { %v253_v27 = vadd.f32 %v252_v26, %v223_v21 }
 0x123   : > { %vm256_vm3 = vcmp.ge.f32.partialorder %v253_v27, 0.0  ;;  %v258_v28 = vmul.f32 0.01, %v253_v27 }
 0x125   : > { %v260_v30 = vsel %vm256_vm3, %v253_v27, %v258_v28 }
 0x126   : > { %292 = vmatpush.msra.mxu1 %v260_v30 }
 0x128   : > { %293 = vmatpush.msra.mxu1 %v259_v32 }
 0x129   : > { %497 = vmatmul.msk.f32.vlgmr.msra.gmra.mxu1 %vm225_vm2, %v262_v31 }
 0x131   : > { %498 = vmatmul.msk.f32.gmra.mxu1 %vm225_vm2, %v263_v33 }
 0x1a6   : > { %v295_v35 = vpop.f32.mrf.mxu1 }
 0x1a7   : > { %v296_v38 = vadd.f32 %v295_v35, %v266_v36 }
 0x1a9   : > { %v303_v42 = vmul.f32 0.01, %v296_v38  ;;  %vm301_vm6 = vcmp.ge.f32.partialorder %v296_v38, 0.0 }
 0x1ab   : > { %v305_v45 = vsel %vm301_vm6, %v296_v38, %v303_v42 }
 0x1ae   : > { %v298_v39 = vpop.f32.mrf.mxu1 }
 0x1af   : > { %v299_v40 = vadd.f32 %v298_v39, %v270_v37 }
 0x1b1   : > { %vm302_vm5 = vcmp.ge.f32.partialorder %v299_v40, 0.0  ;;  %v304_v41 = vmul.f32 0.01, %v299_v40 }
 0x1b3   : > { %v306_v43 = vsel %vm302_vm5, %v299_v40, %v304_v41 }
 0x1b4   : > { %338 = vmatpush.msra.mxu2 %v306_v43 }
 0x1b6   : > { %339 = vmatpush.msra.mxu2 %v305_v45 }
 0x1b7   : > { %499 = vmatmul.msk.f32.vlgmr.msra.gmra.mxu2 %vm225_vm2, %v308_v44 }
 0x1bf   : > { %500 = vmatmul.msk.f32.gmra.mxu2 %vm225_vm2, %v309_v46 }
 0x23a   : > { %v341_v48 = vpop.f32.mrf.mxu2 }
 0x23b   : > { %v342_v51 = vadd.f32 %v341_v48, %v312_v49 }
 0x23d   : > { %v349_v55 = vmul.f32 0.01, %v342_v51  ;;  %vm347_vm8 = vcmp.ge.f32.partialorder %v342_v51, 0.0 }
 0x23f   : > { %v351_v58 = vsel %vm347_vm8, %v342_v51, %v349_v55 }
 0x242   : > { %v344_v52 = vpop.f32.mrf.mxu2 }
 0x243   : > { %v345_v53 = vadd.f32 %v344_v52, %v316_v50 }
 0x245   : > { %vm348_vm7 = vcmp.ge.f32.partialorder %v345_v53, 0.0  ;;  %v350_v54 = vmul.f32 0.01, %v345_v53 }
 0x247   : > { %v352_v56 = vsel %vm348_vm7, %v345_v53, %v350_v54 }
 0x248   : > { %383 = vmatpush.msra.mxu3 %v352_v56 }
 0x24a   : > { %384 = vmatpush.msra.mxu3 %v351_v58 }
 0x24b   : > { %501 = vmatmul.msk.f32.vlgmr.msra.gmra.mxu3 %vm225_vm2, %v354_v57 }
 0x253   : > { %502 = vmatmul.msk.f32.gmra.mxu3 %vm225_vm2, %v355_v59 }
 0x2ce   : > { %v386_v61 = vpop.f32.mrf.mxu3 }
 0x2cf   : > { %v387_v62 = vadd.f32 %v386_v61, %v358_v60 }
 0x2d1   : > { %v391_v63 = vmul.f32 1.442695, %v387_v62 }
 0x2d3   : > { %574 = vpow2.f32 %v391_v63 }
 0x2d6   : > { %v389_v0 = vpop.f32.mrf.mxu3 }
 0x2d9   : > { %v575_v1 = vpop.eup %574 }
 0x2da   : > { %v394_v2 = vrot.slane %v575_v1, 7 }
 0x2dc   : > { %v396_v3 = vmul.f32 %v394_v2, %v783_v4 }
 0x2de   : > { %v397_v5 = vadd.f32 %v396_v3, %v387_v62 }
 0x2e0   : > { %399 = vst [vmem:[%s785_s24] sm:$0x2] %v397_v5 }
 0x2e1   : > { %633 = shalt.err (!%p630_p8)
}
 0x2e2   : > { %511 = dma.vmem_to_hbm [thread:$0]  (%p741_p5), %s414_s29, 32, %s416_s30, %s401_s4  }
 0x2e3 PF: > { %p523_p9 = scmp.ge.s32.totalorder %s672_s15, 2  ;;  %s427_s9 = sand.u32 1, %s660_s12  }
 0x2e4   : > { %s428_s17 = scalar_lea.sflag [#allocation4], %s427_s9 }
 0x2e5   : > { %p518_p10 = pnand %p523_p9, %p745_p6 }
 0x2e7   : > { %p519_p11 = pneg %p518_p10 }
 0x2e9   : > { %655 = dma.done.wait (%p519_p11), %s428_s17, 32  }
 0x2ea   : > { %657 = vsyncadd (%p519_p11), %s428_s17, 4294967264  ;;  %p14_p12 = scmp.ge.s32.totalorder %s728_s18, 5   ;;  %s847_s12 = smov %s664_s13 }
 0x2eb   : > { %s848_s13 = smov %s668_s14  ;;  %s849_s14 = smov %s739_s21 }
 0x2ec   : > { %s850_s15 = smov %s728_s18  ;;  %16 = sbr.rel (!%p14_p12) target bundleno = 4 (0x4), region = 75 }
 0x2f1   :  { %434 = vsyncpa [#allocation3], 1 }
 0x2f2   :  { %436 = vsyncpa [#allocation3 + $0x1], 1 }
 0x2f3   :  { %437 = vsyncpa [#allocation4], 1 }
 0x2f4   :  { %439 = vsyncpa [#allocation4 + $0x1], 1 }

</bundles_post_ra>
